<compile_context>
chip_gen: v7x
topology: tpu7x:2x2x1
jax: 0.10.0
libtpu: 0.0.40
codegen_flags: <defaults>
</compile_context>

<pallas_src>
import functools

import jax
import jax.numpy as jnp
from jax import lax
from jax.experimental import pallas as pl
from jax.experimental.pallas import tpu as pltpu


def _round_up(x, m):
    return -(-x // m) * m


def _critic_kernel(sa_ref, w0t_ref, b0_ref, w1t_ref, b1_ref, w2_ref, b2_ref,
                   out_ref, *, num_q, hidden):
    """One batch tile of the whole-ensemble forward (feature-major activations).

    sa_ref  : (S+A, TB)        streamed input tile (batch on the lane axis)
    w0t_ref : (Q*Hp, S+A)      fused layer-0 weights, per-head transposed+stacked
    b0_ref  : (Q*Hp, 1)        f32
    w1t_ref : (Q, Hp, Hp)      per-head transposed layer-1 weights (no block-diag)
    b1_ref  : (Q*Hp, 1)        f32
    w2_ref  : (Q, Hp)          per-head last-layer weight rows
    b2_ref  : (Q, 1)           f32
    out_ref : (Q, TB)          lane-dense output tile
    """
    cdt = w0t_ref.dtype  # MXU compute dtype (f32 default, bf16 for v6e/v7x path)

    x = sa_ref[...].astype(cdt)                                        # (S+A, TB)

    # Layer 0, all heads fused along sublanes: (Q*Hp, S+A) @ (S+A, TB).
    # f32 accumulation; bias add + ReLU stay f32 on the VPU.
    h = jnp.dot(w0t_ref[...], x, preferred_element_type=jnp.float32) + b0_ref[...]
    h = jnp.maximum(h, 0.0)                                            # (Q*Hp, TB)

    b1 = b1_ref[...]
    w2 = w2_ref[...]
    b2 = b2_ref[...]

    # Per-head layers 1 & 2: statically unrolled loop (num_q is small).
    # Slices are sublane slices at multiples of 8 -> no relayout cost, and
    # layer-1 only does the useful (H,H) x (H,TB) work per head.
    for q in range(num_q):
        lo = q * hidden
        hq = h[lo:lo + hidden, :].astype(cdt)                          # (Hp, TB)
        h1 = (jnp.dot(w1t_ref[q], hq, preferred_element_type=jnp.float32)
              + b1[lo:lo + hidden, :])
        h1 = jnp.maximum(h1, 0.0).astype(cdt)                          # (Hp, TB)
        # Layer 2: (1, Hp) @ (Hp, TB) -> (1, TB); batch stays on lanes, so the
        # store is a full-width row of the lane-dense (Q, TB) output block.
        row = (jnp.dot(w2[q:q + 1, :], h1, preferred_element_type=jnp.float32)
               + b2[q:q + 1, :])
        out_ref[pl.ds(q, 1), :] = row.astype(out_ref.dtype)


def critic_forward(state, action, packed, *, batch_tile=2048):
    """Ensemble critic forward.  Returns q of shape (num_q, B)."""
    B, S = state.shape
    Ba, A = action.shape
    assert Ba == B
    num_q, hp = packed["w2"].shape
    qhp, sa_dim = packed["w0t"].shape
    assert qhp == num_q * hp and sa_dim == S + A

    # Feature-major input: one tiny XLA concat+transpose of the (B, S+A) inputs
    # (this replaces both the old full-array jnp.pad and the wrapper dtype casts).
    sa_t = jnp.concatenate([state, action], axis=-1).T                 # (S+A, B)

    # ---------------- batch-tile selection (VMEM-budget aware) ----------------
    in_item = sa_t.dtype.itemsize
    cdt_item = packed["w1t"].dtype.itemsize
    # Resident weights, double-buffered by the default pipeliner (small now that
    # W1 is per-head; pipeline_mode=pl.Buffered(1) would halve this on v7x).
    w_bytes = 2 * sum(int(packed[k].size) * packed[k].dtype.itemsize
                      for k in ("w0t", "b0", "w1t", "b1", "w2", "b2"))
    # Per-batch-column VMEM: f32 intermediates (h, per-head h1, rows), compute-
    # dtype casts, and double-buffered input/output streams.
    per_col = (4 * (qhp + 2 * hp + num_q)
               + cdt_item * (qhp + hp + S + A)
               + 2 * in_item * (S + A)
               + 2 * 4 * num_q)
    col_budget = max((22 << 20) - w_bytes, 4 << 20)   # fits v7x's 64 MiB with room
    tb_cap = max(128, (col_budget // per_col) // 128 * 128)

    if B <= 128:
        tb = B                                   # single full-extent block
    else:
        tb = max(128, (min(int(batch_tile), tb_cap) // 128) * 128)   # lane-aligned
        # Keep >= 2 batch blocks so ("parallel",) can shard across v7x's 2 TCs.
        tb = min(tb, max(128, _round_up(pl.cdiv(B, 2), 128)))
    grid = (pl.cdiv(B, tb),)                     # partial tail block: no jnp.pad

    need = w_bytes + per_col * tb + (2 << 20)
    vmem_limit = int(min(max(need * 3 // 2, 32 << 20), 48 << 20))

    def _const(shape):
        n = len(shape)
        # Constant index map -> DMA'd once, VMEM-resident across the batch grid.
        return pl.BlockSpec(shape, lambda i, n=n: (0,) * n)

    kernel = functools.partial(_critic_kernel, num_q=num_q, hidden=hp)

    out = pl.pallas_call(
        kernel,
        out_shape=jax.ShapeDtypeStruct((num_q, B), jnp.float32),
        grid=grid,
        in_specs=[
            pl.BlockSpec((S + A, tb), lambda i: (0, i)),   # streamed batch tile
            _const((qhp, S + A)),                          # fused W0^T
            _const((qhp, 1)),                              # b0
            _const((num_q, hp, hp)),                       # per-head W1^T
            _const((qhp, 1)),                              # b1
            _const((num_q, hp)),                           # per-head w2 rows
            _const((num_q, 1)),                            # b2
        ],
        out_specs=pl.BlockSpec((num_q, tb), lambda i: (0, i)),   # lane-dense
        compiler_params=pltpu.CompilerParams(
            dimension_semantics=("parallel",),
            vmem_limit_bytes=vmem_limit),
    )(sa_t, packed["w0t"], packed["b0"], packed["w1t"], packed["b1"],
      packed["w2"], packed["b2"])

    return out


def init_params(key, state_dim, action_dim, hidden_dim, num_q, output_dim=1):
    """Per-head (ensemble) parameters mirroring the module's init scheme."""
    in_dim = state_dim + action_dim
    ks = jax.random.split(key, 4)

    def unif(k, shape, bound):
        return jax.random.uniform(k, shape, jnp.float32, -bound, bound)

    return {
        # hidden layers: ~uniform(+-1/sqrt(fan_in)) weights, bias = 0.1 (module init)
        "w0": unif(ks[0], (num_q, in_dim, hidden_dim), 1.0 / (in_dim ** 0.5)),
        "b0": jnp.full((num_q, hidden_dim), 0.1, jnp.float32),
        "w1": unif(ks[1], (num_q, hidden_dim, hidden_dim), 1.0 / (hidden_dim ** 0.5)),
        "b1": jnp.full((num_q, hidden_dim), 0.1, jnp.float32),
        # last layer: uniform(-0.003, 0.003) for weight and bias (module init)
        "w2": unif(ks[2], (num_q, hidden_dim, output_dim), 0.003),
        "b2": unif(ks[3], (num_q, output_dim), 0.003),
    }


def _pad_axis(x, axis, target):
    pad = target - x.shape[axis]
    if pad == 0:
        return x
    widths = [(0, 0)] * x.ndim
    widths[axis] = (0, pad)
    return jnp.pad(x, widths)


def pack_params(raw, *, compute_dtype=jnp.float32):
    """One-time packing of per-head weights into the feature-major layout.

    compute_dtype=jnp.bfloat16 enables the bf16 MXU path on v6e/v7x (accumulation
    and bias/ReLU stay f32 inside the kernel).  The per-head hidden size is
    padded to a multiple of 8 with inert zeros so all sublane slices are aligned.
    """
    w0, b0 = raw["w0"], raw["b0"]          # (Q, S+A, H), (Q, H)
    w1, b1 = raw["w1"], raw["b1"]          # (Q, H, H),   (Q, H)
    w2, b2 = raw["w2"], raw["b2"]          # (Q, H, 1),   (Q, 1)
    assert w2.shape[-1] == 1, "squeeze_output=True requires output_dim == 1"
    num_q, sa_dim, hid = w0.shape
    hp = _round_up(hid, 8)

    # Layer 0: per-head transposed (H, S+A) blocks stacked along sublanes.
    w0t = _pad_axis(jnp.transpose(w0, (0, 2, 1)), 1, hp).reshape(num_q * hp, sa_dim)
    b0c = _pad_axis(b0, 1, hp).reshape(num_q * hp, 1)
    # Layer 1: per-head transposed weights (no block-diagonal waste).
    w1t = _pad_axis(_pad_axis(jnp.transpose(w1, (0, 2, 1)), 1, hp), 2, hp)
    b1c = _pad_axis(b1, 1, hp).reshape(num_q * hp, 1)
    # Layer 2: per-head weight rows.
    w2r = _pad_axis(w2[:, :, 0], 1, hp)

    return {
        "w0t": w0t.astype(compute_dtype),      # (Q*Hp, S+A)
        "b0": b0c.astype(jnp.float32),         # (Q*Hp, 1)
        "w1t": w1t.astype(compute_dtype),      # (Q, Hp, Hp)
        "b1": b1c.astype(jnp.float32),         # (Q*Hp, 1)
        "w2": w2r.astype(compute_dtype),       # (Q, Hp)
        "b2": b2.astype(jnp.float32),          # (Q, 1)
    }


def _reference(state, action, raw):
    """Pure-JAX reference of the ensemble forward (per-head math)."""
    hi = lax.Precision.HIGHEST
    sa = jnp.concatenate([state, action], axis=-1)
    x = jnp.broadcast_to(sa, (raw["w0"].shape[0],) + sa.shape)   # (Q, B, S+A)
    h = jnp.maximum(jnp.einsum('qbi,qih->qbh', x, raw['w0'], precision=hi)
                    + raw['b0'][:, None, :], 0.0)
    h = jnp.maximum(jnp.einsum('qbh,qhk->qbk', h, raw['w1'], precision=hi)
                    + raw['b1'][:, None, :], 0.0)
    out = (jnp.einsum('qbh,qho->qbo', h, raw['w2'], precision=hi)
           + raw['b2'][:, None, :])
    return out[..., 0]                                            # (Q, B)


if __name__ == "__main__":
    B, STATE_DIM, ACTION_DIM, HIDDEN_DIM, NUM_Q = 8, 12, 4, 32, 5

    key = jax.random.PRNGKey(0)
    k_state, k_action, k_params = jax.random.split(key, 3)
    state = jax.random.normal(k_state, (B, STATE_DIM), jnp.float32)
    action = jax.random.normal(k_action, (B, ACTION_DIM), jnp.float32)
    raw = init_params(k_params, STATE_DIM, ACTION_DIM, HIDDEN_DIM, NUM_Q)
    packed = pack_params(raw)

    # Small-shape run (grid of 1, full-extent blocks).
    q = critic_forward(state, action, packed)
    jax.block_until_ready(q)
    q_ref = _reference(state, action, raw)
    assert q.shape == (NUM_Q, B)
    assert jnp.allclose(q, q_ref, atol=1e-4, rtol=1e-4)

    # Larger batch: exercises the batch grid (>= 2 blocks for megacore), resident
    # weights, and the padding-free partial tail block.
    B2 = 640
    k1, k2 = jax.random.split(jax.random.PRNGKey(1))
    state2 = jax.random.normal(k1, (B2, STATE_DIM), jnp.float32)
    action2 = jax.random.normal(k2, (B2, ACTION_DIM), jnp.float32)
    q2 = critic_forward(state2, action2, packed)
    jax.block_until_ready(q2)
    q2_ref = _reference(state2, action2, raw)
    assert q2.shape == (NUM_Q, B2)
    assert jnp.allclose(q2, q2_ref, atol=1e-4, rtol=1e-4)

    # bf16 weight/activation path (v6e/v7x MXU); f32 accumulation keeps error small.
    packed_bf16 = pack_params(raw, compute_dtype=jnp.bfloat16)
    q_bf16 = critic_forward(state, action, packed_bf16)
    jax.block_until_ready(q_bf16)
    assert jnp.allclose(q_bf16, q_ref, atol=5e-2, rtol=5e-2)

    # TODO(synk): self.infos / log() (histogram + param logging) is host-side
    # training instrumentation with no Pallas equivalent; q_values per head are
    # simply rows of the returned (num_q, B) array.
    print("KERNEL_OK")
</pallas_src>

<mosaic_0001>
module attributes {stable_mosaic.version = 11 : i64} {
  func.func @_critic_kernel(%arg0: i32, %arg1: memref<16x8xf32, #tpu.memory_space<vmem>>, %arg2: memref<160x16xf32, #tpu.memory_space<vmem>>, %arg3: memref<160x1xf32, #tpu.memory_space<vmem>>, %arg4: memref<5x32x32xf32, #tpu.memory_space<vmem>>, %arg5: memref<160x1xf32, #tpu.memory_space<vmem>>, %arg6: memref<5x32xf32, #tpu.memory_space<vmem>>, %arg7: memref<5x1xf32, #tpu.memory_space<vmem>>, %arg8: memref<5x8xf32, #tpu.memory_space<vmem>>) attributes {dimension_semantics = [#tpu.dimension_semantics<parallel>], iteration_bounds = array<i64: 1>, scalar_prefetch = 0 : i64, scratch_operands = 0 : i64, tpu.core_type = #tpu.core_type<tc>, window_params = [{transform_indices = @transform_0, window_bounds = array<i64: 16, 8>}, {pipeline_mode = #tpu.pipeline_mode<synchronous>, transform_indices = @transform_1, window_bounds = array<i64: 160, 16>}, {pipeline_mode = #tpu.pipeline_mode<synchronous>, transform_indices = @transform_2, window_bounds = array<i64: 160, 1>}, {pipeline_mode = #tpu.pipeline_mode<synchronous>, transform_indices = @transform_3, window_bounds = array<i64: 5, 32, 32>}, {pipeline_mode = #tpu.pipeline_mode<synchronous>, transform_indices = @transform_4, window_bounds = array<i64: 160, 1>}, {pipeline_mode = #tpu.pipeline_mode<synchronous>, transform_indices = @transform_5, window_bounds = array<i64: 5, 32>}, {pipeline_mode = #tpu.pipeline_mode<synchronous>, transform_indices = @transform_6, window_bounds = array<i64: 5, 1>}, {transform_indices = @transform_7, window_bounds = array<i64: 5, 8>}]} {
    %c0 = arith.constant 0 : index
    %c0_0 = arith.constant 0 : index
    %0 = vector.load %arg1[%c0, %c0_0] : memref<16x8xf32, #tpu.memory_space<vmem>>, vector<16x8xf32>
    %c0_1 = arith.constant 0 : index
    %c0_2 = arith.constant 0 : index
    %1 = vector.load %arg2[%c0_1, %c0_2] : memref<160x16xf32, #tpu.memory_space<vmem>>, vector<160x16xf32>
    %cst = arith.constant dense<0.000000e+00> : vector<160x8xf32>
    %2 = tpu.matmul %1, %0, %cst {dimension_numbers = #tpu.dot_dimension_numbers<[1], [0], [0], [1], [0, 0, 1, 1], [], []>} : vector<160x16xf32>, vector<16x8xf32>, vector<160x8xf32> -> vector<160x8xf32>
    %c0_3 = arith.constant 0 : index
    %c0_4 = arith.constant 0 : index
    %3 = vector.load %arg3[%c0_3, %c0_4] : memref<160x1xf32, #tpu.memory_space<vmem>>, vector<160x1xf32>
    %4 = vector.broadcast %3 : vector<160x1xf32> to vector<160x8xf32>
    %5 = arith.addf %2, %4 : vector<160x8xf32>
    %cst_5 = arith.constant 0.000000e+00 : f32
    %6 = vector.broadcast %cst_5 : f32 to vector<160x8xf32>
    %7 = arith.maximumf %5, %6 : vector<160x8xf32>
    %c0_6 = arith.constant 0 : index
    %c0_7 = arith.constant 0 : index
    %8 = vector.load %arg5[%c0_6, %c0_7] : memref<160x1xf32, #tpu.memory_space<vmem>>, vector<160x1xf32>
    %c0_8 = arith.constant 0 : index
    %c0_9 = arith.constant 0 : index
    %9 = vector.load %arg6[%c0_8, %c0_9] : memref<5x32xf32, #tpu.memory_space<vmem>>, vector<5x32xf32>
    %c0_10 = arith.constant 0 : index
    %c0_11 = arith.constant 0 : index
    %10 = vector.load %arg7[%c0_10, %c0_11] : memref<5x1xf32, #tpu.memory_space<vmem>>, vector<5x1xf32>
    %11 = vector.extract_strided_slice %7 {offsets = [0, 0], sizes = [32, 8], strides = [1, 1]} : vector<160x8xf32> to vector<32x8xf32>
    %c0_12 = arith.constant 0 : index
    %c0_13 = arith.constant 0 : index
    %c0_14 = arith.constant 0 : index
    %12 = vector.load %arg4[%c0_12, %c0_13, %c0_14] : memref<5x32x32xf32, #tpu.memory_space<vmem>>, vector<1x32x32xf32>
    %13 = vector.shape_cast %12 : vector<1x32x32xf32> to vector<32x32xf32>
    %cst_15 = arith.constant dense<0.000000e+00> : vector<32x8xf32>
    %14 = tpu.matmul %13, %11, %cst_15 {dimension_numbers = #tpu.dot_dimension_numbers<[1], [0], [0], [1], [0, 0, 1, 1], [], []>} : vector<32x32xf32>, vector<32x8xf32>, vector<32x8xf32> -> vector<32x8xf32>
    %15 = vector.extract_strided_slice %8 {offsets = [0, 0], sizes = [32, 1], strides = [1, 1]} : vector<160x1xf32> to vector<32x1xf32>
    %16 = vector.broadcast %15 : vector<32x1xf32> to vector<32x8xf32>
    %17 = arith.addf %14, %16 : vector<32x8xf32>
    %cst_16 = arith.constant 0.000000e+00 : f32
    %18 = vector.broadcast %cst_16 : f32 to vector<32x8xf32>
    %19 = arith.maximumf %17, %18 : vector<32x8xf32>
    %20 = vector.extract_strided_slice %9 {offsets = [0, 0], sizes = [1, 32], strides = [1, 1]} : vector<5x32xf32> to vector<1x32xf32>
    %cst_17 = arith.constant dense<0.000000e+00> : vector<1x8xf32>
    %21 = tpu.matmul %20, %19, %cst_17 {dimension_numbers = #tpu.dot_dimension_numbers<[1], [0], [0], [1], [0, 0, 1, 1], [], []>} : vector<1x32xf32>, vector<32x8xf32>, vector<1x8xf32> -> vector<1x8xf32>
    %22 = vector.extract_strided_slice %10 {offsets = [0, 0], sizes = [1, 1], strides = [1, 1]} : vector<5x1xf32> to vector<1x1xf32>
    %23 = vector.broadcast %22 : vector<1x1xf32> to vector<1x8xf32>
    %24 = arith.addf %21, %23 : vector<1x8xf32>
    %c0_18 = arith.constant 0 : index
    %c0_19 = arith.constant 0 : index
    %25 = vector.load %arg8[%c0_18, %c0_19] : memref<5x8xf32, #tpu.memory_space<vmem>>, vector<1x8xf32>
    tpu.vector_store %arg8[%c0_18, %c0_19], %24 {strides = array<i32>} : memref<5x8xf32, #tpu.memory_space<vmem>>, vector<1x8xf32>,
    %26 = vector.extract_strided_slice %7 {offsets = [32, 0], sizes = [32, 8], strides = [1, 1]} : vector<160x8xf32> to vector<32x8xf32>
    %c1 = arith.constant 1 : index
    %c0_20 = arith.constant 0 : index
    %c0_21 = arith.constant 0 : index
    %27 = vector.load %arg4[%c1, %c0_20, %c0_21] : memref<5x32x32xf32, #tpu.memory_space<vmem>>, vector<1x32x32xf32>
    %28 = vector.shape_cast %27 : vector<1x32x32xf32> to vector<32x32xf32>
    %cst_22 = arith.constant dense<0.000000e+00> : vector<32x8xf32>
    %29 = tpu.matmul %28, %26, %cst_22 {dimension_numbers = #tpu.dot_dimension_numbers<[1], [0], [0], [1], [0, 0, 1, 1], [], []>} : vector<32x32xf32>, vector<32x8xf32>, vector<32x8xf32> -> vector<32x8xf32>
    %30 = vector.extract_strided_slice %8 {offsets = [32, 0], sizes = [32, 1], strides = [1, 1]} : vector<160x1xf32> to vector<32x1xf32>
    %31 = vector.broadcast %30 : vector<32x1xf32> to vector<32x8xf32>
    %32 = arith.addf %29, %31 : vector<32x8xf32>
    %cst_23 = arith.constant 0.000000e+00 : f32
    %33 = vector.broadcast %cst_23 : f32 to vector<32x8xf32>
    %34 = arith.maximumf %32, %33 : vector<32x8xf32>
    %35 = vector.extract_strided_slice %9 {offsets = [1, 0], sizes = [1, 32], strides = [1, 1]} : vector<5x32xf32> to vector<1x32xf32>
    %cst_24 = arith.constant dense<0.000000e+00> : vector<1x8xf32>
    %36 = tpu.matmul %35, %34, %cst_24 {dimension_numbers = #tpu.dot_dimension_numbers<[1], [0], [0], [1], [0, 0, 1, 1], [], []>} : vector<1x32xf32>, vector<32x8xf32>, vector<1x8xf32> -> vector<1x8xf32>
    %37 = vector.extract_strided_slice %10 {offsets = [1, 0], sizes = [1, 1], strides = [1, 1]} : vector<5x1xf32> to vector<1x1xf32>
    %38 = vector.broadcast %37 : vector<1x1xf32> to vector<1x8xf32>
    %39 = arith.addf %36, %38 : vector<1x8xf32>
    %c1_25 = arith.constant 1 : index
    %c0_26 = arith.constant 0 : index
    %40 = vector.load %arg8[%c1_25, %c0_26] : memref<5x8xf32, #tpu.memory_space<vmem>>, vector<1x8xf32>
    tpu.vector_store %arg8[%c1_25, %c0_26], %39 {strides = array<i32>} : memref<5x8xf32, #tpu.memory_space<vmem>>, vector<1x8xf32>,
    %41 = vector.extract_strided_slice %7 {offsets = [64, 0], sizes = [32, 8], strides = [1, 1]} : vector<160x8xf32> to vector<32x8xf32>
    %c2 = arith.constant 2 : index
    %c0_27 = arith.constant 0 : index
    %c0_28 = arith.constant 0 : index
    %42 = vector.load %arg4[%c2, %c0_27, %c0_28] : memref<5x32x32xf32, #tpu.memory_space<vmem>>, vector<1x32x32xf32>
    %43 = vector.shape_cast %42 : vector<1x32x32xf32> to vector<32x32xf32>
    %cst_29 = arith.constant dense<0.000000e+00> : vector<32x8xf32>
    %44 = tpu.matmul %43, %41, %cst_29 {dimension_numbers = #tpu.dot_dimension_numbers<[1], [0], [0], [1], [0, 0, 1, 1], [], []>} : vector<32x32xf32>, vector<32x8xf32>, vector<32x8xf32> -> vector<32x8xf32>
    %45 = vector.extract_strided_slice %8 {offsets = [64, 0], sizes = [32, 1], strides = [1, 1]} : vector<160x1xf32> to vector<32x1xf32>
    %46 = vector.broadcast %45 : vector<32x1xf32> to vector<32x8xf32>
    %47 = arith.addf %44, %46 : vector<32x8xf32>
    %cst_30 = arith.constant 0.000000e+00 : f32
    %48 = vector.broadcast %cst_30 : f32 to vector<32x8xf32>
    %49 = arith.maximumf %47, %48 : vector<32x8xf32>
    %50 = vector.extract_strided_slice %9 {offsets = [2, 0], sizes = [1, 32], strides = [1, 1]} : vector<5x32xf32> to vector<1x32xf32>
    %cst_31 = arith.constant dense<0.000000e+00> : vector<1x8xf32>
    %51 = tpu.matmul %50, %49, %cst_31 {dimension_numbers = #tpu.dot_dimension_numbers<[1], [0], [0], [1], [0, 0, 1, 1], [], []>} : vector<1x32xf32>, vector<32x8xf32>, vector<1x8xf32> -> vector<1x8xf32>
    %52 = vector.extract_strided_slice %10 {offsets = [2, 0], sizes = [1, 1], strides = [1, 1]} : vector<5x1xf32> to vector<1x1xf32>
    %53 = vector.broadcast %52 : vector<1x1xf32> to vector<1x8xf32>
    %54 = arith.addf %51, %53 : vector<1x8xf32>
    %c2_32 = arith.constant 2 : index
    %c0_33 = arith.constant 0 : index
    %55 = vector.load %arg8[%c2_32, %c0_33] : memref<5x8xf32, #tpu.memory_space<vmem>>, vector<1x8xf32>
    tpu.vector_store %arg8[%c2_32, %c0_33], %54 {strides = array<i32>} : memref<5x8xf32, #tpu.memory_space<vmem>>, vector<1x8xf32>,
    %56 = vector.extract_strided_slice %7 {offsets = [96, 0], sizes = [32, 8], strides = [1, 1]} : vector<160x8xf32> to vector<32x8xf32>
    %c3 = arith.constant 3 : index
    %c0_34 = arith.constant 0 : index
    %c0_35 = arith.constant 0 : index
    %57 = vector.load %arg4[%c3, %c0_34, %c0_35] : memref<5x32x32xf32, #tpu.memory_space<vmem>>, vector<1x32x32xf32>
    %58 = vector.shape_cast %57 : vector<1x32x32xf32> to vector<32x32xf32>
    %cst_36 = arith.constant dense<0.000000e+00> : vector<32x8xf32>
    %59 = tpu.matmul %58, %56, %cst_36 {dimension_numbers = #tpu.dot_dimension_numbers<[1], [0], [0], [1], [0, 0, 1, 1], [], []>} : vector<32x32xf32>, vector<32x8xf32>, vector<32x8xf32> -> vector<32x8xf32>
    %60 = vector.extract_strided_slice %8 {offsets = [96, 0], sizes = [32, 1], strides = [1, 1]} : vector<160x1xf32> to vector<32x1xf32>
    %61 = vector.broadcast %60 : vector<32x1xf32> to vector<32x8xf32>
    %62 = arith.addf %59, %61 : vector<32x8xf32>
    %cst_37 = arith.constant 0.000000e+00 : f32
    %63 = vector.broadcast %cst_37 : f32 to vector<32x8xf32>
    %64 = arith.maximumf %62, %63 : vector<32x8xf32>
    %65 = vector.extract_strided_slice %9 {offsets = [3, 0], sizes = [1, 32], strides = [1, 1]} : vector<5x32xf32> to vector<1x32xf32>
    %cst_38 = arith.constant dense<0.000000e+00> : vector<1x8xf32>
    %66 = tpu.matmul %65, %64, %cst_38 {dimension_numbers = #tpu.dot_dimension_numbers<[1], [0], [0], [1], [0, 0, 1, 1], [], []>} : vector<1x32xf32>, vector<32x8xf32>, vector<1x8xf32> -> vector<1x8xf32>
    %67 = vector.extract_strided_slice %10 {offsets = [3, 0], sizes = [1, 1], strides = [1, 1]} : vector<5x1xf32> to vector<1x1xf32>
    %68 = vector.broadcast %67 : vector<1x1xf32> to vector<1x8xf32>
    %69 = arith.addf %66, %68 : vector<1x8xf32>
    %c3_39 = arith.constant 3 : index
    %c0_40 = arith.constant 0 : index
    %70 = vector.load %arg8[%c3_39, %c0_40] : memref<5x8xf32, #tpu.memory_space<vmem>>, vector<1x8xf32>
    tpu.vector_store %arg8[%c3_39, %c0_40], %69 {strides = array<i32>} : memref<5x8xf32, #tpu.memory_space<vmem>>, vector<1x8xf32>,
    %71 = vector.extract_strided_slice %7 {offsets = [128, 0], sizes = [32, 8], strides = [1, 1]} : vector<160x8xf32> to vector<32x8xf32>
    %c4 = arith.constant 4 : index
    %c0_41 = arith.constant 0 : index
    %c0_42 = arith.constant 0 : index
    %72 = vector.load %arg4[%c4, %c0_41, %c0_42] : memref<5x32x32xf32, #tpu.memory_space<vmem>>, vector<1x32x32xf32>
    %73 = vector.shape_cast %72 : vector<1x32x32xf32> to vector<32x32xf32>
    %cst_43 = arith.constant dense<0.000000e+00> : vector<32x8xf32>
    %74 = tpu.matmul %73, %71, %cst_43 {dimension_numbers = #tpu.dot_dimension_numbers<[1], [0], [0], [1], [0, 0, 1, 1], [], []>} : vector<32x32xf32>, vector<32x8xf32>, vector<32x8xf32> -> vector<32x8xf32>
    %75 = vector.extract_strided_slice %8 {offsets = [128, 0], sizes = [32, 1], strides = [1, 1]} : vector<160x1xf32> to vector<32x1xf32>
    %76 = vector.broadcast %75 : vector<32x1xf32> to vector<32x8xf32>
    %77 = arith.addf %74, %76 : vector<32x8xf32>
    %cst_44 = arith.constant 0.000000e+00 : f32
    %78 = vector.broadcast %cst_44 : f32 to vector<32x8xf32>
    %79 = arith.maximumf %77, %78 : vector<32x8xf32>
    %80 = vector.extract_strided_slice %9 {offsets = [4, 0], sizes = [1, 32], strides = [1, 1]} : vector<5x32xf32> to vector<1x32xf32>
    %cst_45 = arith.constant dense<0.000000e+00> : vector<1x8xf32>
    %81 = tpu.matmul %80, %79, %cst_45 {dimension_numbers = #tpu.dot_dimension_numbers<[1], [0], [0], [1], [0, 0, 1, 1], [], []>} : vector<1x32xf32>, vector<32x8xf32>, vector<1x8xf32> -> vector<1x8xf32>
    %82 = vector.extract_strided_slice %10 {offsets = [4, 0], sizes = [1, 1], strides = [1, 1]} : vector<5x1xf32> to vector<1x1xf32>
    %83 = vector.broadcast %82 : vector<1x1xf32> to vector<1x8xf32>
    %84 = arith.addf %81, %83 : vector<1x8xf32>
    %c4_46 = arith.constant 4 : index
    %c0_47 = arith.constant 0 : index
    %85 = vector.load %arg8[%c4_46, %c0_47] : memref<5x8xf32, #tpu.memory_space<vmem>>, vector<1x8xf32>
    tpu.vector_store %arg8[%c4_46, %c0_47], %84 {strides = array<i32>} : memref<5x8xf32, #tpu.memory_space<vmem>>, vector<1x8xf32>,
    return
  }
  func.func @transform_0(%arg0: i32) -> (i32, i32) {
    %c0_i32 = arith.constant 0 : i32
    %c0_i32_0 = arith.constant 0 : i32
    return %c0_i32, %arg0 : i32, i32
  }
  func.func @transform_1(%arg0: i32) -> (i32, i32) {
    %c0_i32 = arith.constant 0 : i32
    %c0_i32_0 = arith.constant 0 : i32
    %c0_i32_1 = arith.constant 0 : i32
    return %c0_i32, %c0_i32_0 : i32, i32
  }
  func.func @transform_2(%arg0: i32) -> (i32, i32) {
    %c0_i32 = arith.constant 0 : i32
    %c0_i32_0 = arith.constant 0 : i32
    %c0_i32_1 = arith.constant 0 : i32
    return %c0_i32, %c0_i32_0 : i32, i32
  }
  func.func @transform_3(%arg0: i32) -> (i32, i32, i32) {
    %c0_i32 = arith.constant 0 : i32
    %c0_i32_0 = arith.constant 0 : i32
    %c0_i32_1 = arith.constant 0 : i32
    %c0_i32_2 = arith.constant 0 : i32
    return %c0_i32, %c0_i32_0, %c0_i32_1 : i32, i32, i32
  }
  func.func @transform_4(%arg0: i32) -> (i32, i32) {
    %c0_i32 = arith.constant 0 : i32
    %c0_i32_0 = arith.constant 0 : i32
    %c0_i32_1 = arith.constant 0 : i32
    return %c0_i32, %c0_i32_0 : i32, i32
  }
  func.func @transform_5(%arg0: i32) -> (i32, i32) {
    %c0_i32 = arith.constant 0 : i32
    %c0_i32_0 = arith.constant 0 : i32
    %c0_i32_1 = arith.constant 0 : i32
    return %c0_i32, %c0_i32_0 : i32, i32
  }
  func.func @transform_6(%arg0: i32) -> (i32, i32) {
    %c0_i32 = arith.constant 0 : i32
    %c0_i32_0 = arith.constant 0 : i32
    %c0_i32_1 = arith.constant 0 : i32
    return %c0_i32, %c0_i32_0 : i32, i32
  }
  func.func @transform_7(%arg0: i32) -> (i32, i32) {
    %c0_i32 = arith.constant 0 : i32
    %c0_i32_0 = arith.constant 0 : i32
    return %c0_i32, %arg0 : i32, i32
  }
}

</mosaic_0001>

<bundles_post_ra>
// kernel: tpu_custom_call.1
= control target key start
LH: loop header
LB: loop body
LE: loop exit
PB: predicated region body
PF: predicated region fallthrough
CT: control target
= control target key end

     0   :  { %vm169_vm0 = vcmask 130048   ;;  %v1877_v4 = vmov 0   ;;  %s2344_s0 = inlined_call_operand.vmem [shape: f32[16,8], index: 0, kind: input, shape index: {}]   ;;  %s2345_s1 = inlined_call_operand.vmem [shape: f32[160,16], index: 1, kind: input, shape index: {}]   ;;  %s2346_s2 = inlined_call_operand.vmem [shape: f32[160,1], index: 2, kind: input, shape index: {}]   ;;  %s2347_s3 = inlined_call_operand.vmem [shape: f32[5,32,32], index: 3, kind: input, shape index: {}]   ;;  %s2348_s4 = inlined_call_operand.vmem [shape: f32[160,1], index: 4, kind: input, shape index: {}]   ;;  %s2349_s5 = inlined_call_operand.vmem [shape: f32[5,32], index: 5, kind: input, shape index: {}]   ;;  %s2350_s6 = inlined_call_operand.vmem [shape: f32[5,1], index: 6, kind: input, shape index: {}]   ;;  %s2351_s7 = inlined_call_operand.hbm [shape: f32[5,8], index: 7, kind: output, shape index: {}]  }
   0x1   :  { %v27_v0 = vld [vmem:[%s2344_s0] sm:$0xff]  ;;  %v28_v1 = vld [vmem:[%s2344_s0 + $0x8] sm:$0xff]  ;;  %1851 = vset.pattern.permute.xlu0 %v1877_v4  ;;  %1852 = vset.pattern.permute.xlu1 %v1877_v4  ;;  %v51_v7 = vld [vmem:[%s2346_s2 + $0x10] sm:$0xff] }
   0x2   :  { %v29_v2 = vld [vmem:[%s2345_s1] sm:$0xff]  ;;  %v1772_v3 = vpack.c.bf16 %v28_v1, %v27_v0  ;;  %v50_v6 = vld [vmem:[%s2346_s2 + $0x8] sm:$0xff]  ;;  %81 = vperm.xlu1 %1852, %v51_v7   ;;  %v31_v9 = vld [vmem:[%s2345_s1 + $0x10] sm:$0xff] }
   0x3   :  { %1617 = vmatprep.mubr.msk.f32.mxu0 %vm169_vm0, %v29_v2  ;;  %v49_v5 = vld [vmem:[%s2346_s2] sm:$0xff]  ;;  %v30_v8 = vld [vmem:[%s2345_s1 + $0x8] sm:$0xff]  ;;  %v52_v10 = vld [vmem:[%s2346_s2 + $0x18] sm:$0xff] }
   0x4   :  { %71 = vperm.xlu0 %1851, %v49_v5   ;;  %1773 = vmatprep.subr.bf16.mxu0 %v1772_v3  ;;  %v415_v11 = vld [vmem:[%s2348_s4] sm:$0xff]  ;;  %v32_v12 = vld [vmem:[%s2345_s1 + $0x18] sm:$0xff]  ;;  %v416_v14 = vld [vmem:[%s2348_s4 + $0x8] sm:$0xff] }
   0x5   :  { %1775 = vmatpush3.bf16.msra.mxu0 %v1772_v3  ;;  %v33_v13 = vld [vmem:[%s2345_s1 + $0x20] sm:$0xff]  ;;  %v417_v15 = vld [vmem:[%s2348_s4 + $0x10] sm:$0xff]  ;;  %v34_v16 = vld [vmem:[%s2345_s1 + $0x28] sm:$0xff] }
   0x6   :  { %86 = vperm.xlu1 %1852, %v52_v10   ;;  %v35_v17 = vld [vmem:[%s2345_s1 + $0x30] sm:$0xff]  ;;  %v418_v18 = vld [vmem:[%s2348_s4 + $0x18] sm:$0xff]  ;;  %v53_v19 = vld [vmem:[%s2346_s2 + $0x20] sm:$0xff] }
   0x7   :  { %v36_v20 = vld [vmem:[%s2345_s1 + $0x38] sm:$0xff]  ;;  %v37_v21 = vld [vmem:[%s2345_s1 + $0x40] sm:$0xff]  ;;  %v54_v22 = vld [vmem:[%s2346_s2 + $0x28] sm:$0xff] }
   0x8   :  { %76 = vperm.xlu0 %1851, %v50_v6   ;;  %1618 = vmatmul.mubr.msk.f32.vlgmr.msra.gmra.mrb[0].mxu0 %vm169_vm0, %v30_v8  ;;  %v55_v23 = vld [vmem:[%s2346_s2 + $0x30] sm:$0xff]  ;;  %v38_v24 = vld [vmem:[%s2345_s1 + $0x48] sm:$0xff]  ;;  %v56_v26 = vld [vmem:[%s2346_s2 + $0x38] sm:$0xff] }
   0x9   :  { %1620 = vmatprep.mubr.msk.f32.mxu0 %vm169_vm0, %v31_v9  ;;  %v39_v25 = vld [vmem:[%s2345_s1 + $0x50] sm:$0xff] }
   0xa   :  { %448 = vperm.xlu1 %1852, %v416_v14  }
   0xc   :  { %443 = vperm.xlu0 %1851, %v415_v11   ;;  %1621 = vmatmul.mubr.msk.f32.gmra.mrb[2].mxu0 %vm169_vm0, %v32_v12 }
   0xd   :  { %1623 = vmatprep.mubr.msk.f32.mxu0 %vm169_vm0, %v33_v13 }
   0xe   :  { %458 = vperm.xlu1 %1852, %v418_v18  }
  0x10   :  { %453 = vperm.xlu0 %1851, %v417_v15   ;;  %1624 = vmatmul.mubr.msk.f32.gmra.mrb[4].mxu0 %vm169_vm0, %v34_v16 }
  0x11   :  { %1626 = vmatprep.mubr.msk.f32.mxu0 %vm169_vm0, %v35_v17 }
  0x12   :  { %96 = vperm.xlu1 %1852, %v54_v22  }
  0x14   :  { %91 = vperm.xlu0 %1851, %v53_v19   ;;  %1627 = vmatmul.mubr.msk.f32.gmra.mrb[6].mxu0 %vm169_vm0, %v36_v20 }
  0x15   :  { %1629 = vmatprep.mubr.msk.f32.mxu0 %vm169_vm0, %v37_v21 }
  0x16   :  { %12 = vsyncpa [#allocation3], 0  ;;  %v419_v27 = vld [vmem:[%s2348_s4 + $0x20] sm:$0xff]  ;;  %v40_v28 = vld [vmem:[%s2345_s1 + $0x58] sm:$0xff]  ;;  %106 = vperm.xlu1 %1852, %v56_v26   ;;  %vm461_vm1 = vcmask 261120   ;;  %vm1879_vm2 = vmmov 0  }
  0x17   :  { %v41_v29 = vld [vmem:[%s2345_s1 + $0x60] sm:$0xff]  ;;  %v420_v30 = vld [vmem:[%s2348_s4 + $0x28] sm:$0xff]  ;;  %v421_v31 = vld [vmem:[%s2348_s4 + $0x30] sm:$0xff]  ;;  %vm641_vm3 = vcmask 57344  }
  0x18   :  { %101 = vperm.xlu0 %1851, %v55_v23   ;;  %1630 = vmatmul.mubr.msk.f32.gmra.mrb[8].mxu0 %vm169_vm0, %v38_v24  ;;  %v42_v32 = vld [vmem:[%s2345_s1 + $0x68] sm:$0xff]  ;;  %v43_v33 = vld [vmem:[%s2345_s1 + $0x70] sm:$0xff]  ;;  %v422_v34 = vld [vmem:[%s2348_s4 + $0x38] sm:$0xff] }
  0x19   :  { %1632 = vmatprep.mubr.msk.f32.mxu0 %vm169_vm0, %v39_v25  ;;  %v57_v35 = vld [vmem:[%s2346_s2 + $0x40] sm:$0xff]  ;;  %v44_v36 = vld [vmem:[%s2345_s1 + $0x78] sm:$0xff]  ;;  %v58_v38 = vld [vmem:[%s2346_s2 + $0x48] sm:$0xff] }
  0x1a   :  { %655 = vperm.xlu1 %1852, %v420_v30   ;;  %v45_v37 = vld [vmem:[%s2345_s1 + $0x80] sm:$0xff]  ;;  %v59_v39 = vld [vmem:[%s2346_s2 + $0x50] sm:$0xff]  ;;  %v46_v40 = vld [vmem:[%s2345_s1 + $0x88] sm:$0xff] }
  0x1b   :  { %v47_v41 = vld [vmem:[%s2345_s1 + $0x90] sm:$0xff]  ;;  %v60_v42 = vld [vmem:[%s2346_s2 + $0x58] sm:$0xff]  ;;  %v61_v43 = vld [vmem:[%s2346_s2 + $0x60] sm:$0xff] }
  0x1c   :  { %650 = vperm.xlu0 %1851, %v419_v27   ;;  %1633 = vmatmul.mubr.msk.f32.gmra.mrb[10].mxu0 %vm169_vm0, %v40_v28  ;;  %v48_v44 = vld [vmem:[%s2345_s1 + $0x98] sm:$0xff]  ;;  %v62_v45 = vld [vmem:[%s2346_s2 + $0x68] sm:$0xff]  ;;  %v63_v46 = vld [vmem:[%s2346_s2 + $0x70] sm:$0xff] }
  0x1d   :  { %1635 = vmatprep.mubr.msk.f32.mxu0 %vm169_vm0, %v41_v29  ;;  %v64_v47 = vld [vmem:[%s2346_s2 + $0x78] sm:$0xff]  ;;  %v65_v48 = vld [vmem:[%s2346_s2 + $0x80] sm:$0xff]  ;;  %v66_v49 = vld [vmem:[%s2346_s2 + $0x88] sm:$0xff] }
  0x1e   :  { %665 = vperm.xlu1 %1852, %v422_v34   ;;  %v67_v50 = vld [vmem:[%s2346_s2 + $0x90] sm:$0xff]  ;;  %v68_v51 = vld [vmem:[%s2346_s2 + $0x98] sm:$0xff]  ;;  %v423_v52 = vld [vmem:[%s2348_s4 + $0x40] sm:$0xff] }
  0x1f   :  { %v424_v53 = vld [vmem:[%s2348_s4 + $0x48] sm:$0xff]  ;;  %v425_v54 = vld [vmem:[%s2348_s4 + $0x50] sm:$0xff]  ;;  %v426_v55 = vld [vmem:[%s2348_s4 + $0x58] sm:$0xff] }
  0x20   :  { %660 = vperm.xlu0 %1851, %v421_v31   ;;  %1636 = vmatmul.mubr.msk.f32.gmra.mrb[12].mxu0 %vm169_vm0, %v42_v32  ;;  %v427_v56 = vld [vmem:[%s2348_s4 + $0x60] sm:$0xff]  ;;  %v428_v57 = vld [vmem:[%s2348_s4 + $0x68] sm:$0xff]  ;;  %v429_v58 = vld [vmem:[%s2348_s4 + $0x70] sm:$0xff] }
  0x21   :  { %1638 = vmatprep.mubr.msk.f32.mxu0 %vm169_vm0, %v43_v33  ;;  %v430_v59 = vld [vmem:[%s2348_s4 + $0x78] sm:$0xff]  ;;  %v431_v60 = vld [vmem:[%s2348_s4 + $0x80] sm:$0xff]  ;;  %v432_v61 = vld [vmem:[%s2348_s4 + $0x88] sm:$0xff] }
  0x22   :  { %116 = vperm.xlu1 %1852, %v58_v38   ;;  %v433_v62 = vld [vmem:[%s2348_s4 + $0x90] sm:$0xff]  ;;  %v434_v63 = vld [vmem:[%s2348_s4 + $0x98] sm:$0xff]  ;;  %v436_v0 = vld [vmem:[%s2350_s6] sm:$0x1f] }
  0x23   :  { %v437_v1 = vld [vmem:[%s2347_s3] sm:$0xff] }
  0x24   :  { %111 = vperm.xlu0 %1851, %v57_v35   ;;  %1639 = vmatmul.mubr.msk.f32.gmra.mrb[14].mxu0 %vm169_vm0, %v44_v36 }
  0x25   :  { %1641 = vmatprep.mubr.msk.f32.mxu0 %vm169_vm0, %v45_v37  ;;  %1655 = vmatprep.mubr.msk.f32.mxu1 %vm461_vm1, %v437_v1 }
  0x26   :  { %126 = vperm.xlu1 %1852, %v60_v42  }
  0x28   :  { %121 = vperm.xlu0 %1851, %v59_v39   ;;  %1642 = vmatmul.mubr.msk.f32.gmra.mrb[16].mxu0 %vm169_vm0, %v46_v40 }
  0x29   :  { %1644 = vmatprep.mubr.msk.f32.mxu0 %vm169_vm0, %v47_v41 }
  0x2a   :  { %136 = vperm.xlu1 %1852, %v62_v45   ;;  %v438_v45 = vld [vmem:[%s2347_s3 + $0x8] sm:$0xff] }
  0x2c   :  { %131 = vperm.xlu0 %1851, %v61_v43   ;;  %1645 = vmatmul.mubr.msk.f32.gmra.mrb[18].mxu0 %vm169_vm0, %v48_v44 }
  0x2e   :  { %146 = vperm.xlu1 %1852, %v64_v47  }
  0x30   :  { %141 = vperm.xlu0 %1851, %v63_v46  }
  0x32   :  { %156 = vperm.xlu1 %1852, %v66_v49  }
  0x34   :  { %151 = vperm.xlu0 %1851, %v65_v48   ;;  %v439_v48 = vld [vmem:[%s2347_s3 + $0x10] sm:$0xff] }
  0x36   :  { %166 = vperm.xlu1 %1852, %v68_v51  }
  0x38   :  { %161 = vperm.xlu0 %1851, %v67_v50  }
  0x3a   :  { %857 = vperm.xlu1 %1852, %v424_v53  }
  0x3c   :  { %852 = vperm.xlu0 %1851, %v423_v52  }
  0x3e   :  { %867 = vperm.xlu1 %1852, %v426_v55  }
  0x40   :  { %862 = vperm.xlu0 %1851, %v425_v54   ;;  %v440_v54 = vld [vmem:[%s2347_s3 + $0x18] sm:$0xff] }
  0x42   :  { %1059 = vperm.xlu1 %1852, %v428_v57  }
  0x44   :  { %1054 = vperm.xlu0 %1851, %v427_v56  }
  0x46   :  { %1069 = vperm.xlu1 %1852, %v430_v59  }
  0x48   :  { %1064 = vperm.xlu0 %1851, %v429_v58  }
  0x4a   :  { %1261 = vperm.xlu1 %1852, %v432_v61  }
  0x4c   :  { %1256 = vperm.xlu0 %1851, %v431_v60  }
  0x4e   :  { %1271 = vperm.xlu1 %1852, %v434_v63  }
  0x50   :  { %1266 = vperm.xlu0 %1851, %v433_v62  }
  0x54   :  { %565 = vperm.xlu0 %1851, %v436_v0  }
  0x81   :  { %v82_v2 = vpop.permute.xlu1 %81 }
  0x83   :  { %v72_v3 = vpop.permute.xlu0 %71 }
  0x85   :  { %v87_v4 = vpop.permute.xlu1 %86 }
  0x87   :  { %v77_v5 = vpop.permute.xlu0 %76 }
  0x89   :  { %v2135_v6 = vpop.permute.xlu1 %448 }
  0x8b   :  { %v2137_v7 = vpop.permute.xlu0 %443 }
  0x8d   :  { %v2139_v8 = vpop.permute.xlu1 %458 }
  0x8f   :  { %v2141_v9 = vpop.permute.xlu0 %453 }
  0x91   :  { %v97_v10 = vpop.permute.xlu1 %96 }
  0x93   :  { %v92_v11 = vpop.permute.xlu0 %91 }
  0x95   :  { %v107_v12 = vpop.permute.xlu1 %106 }
  0x97   :  { %v102_v13 = vpop.permute.xlu0 %101 }
  0x99   :  { %v2143_v14 = vpop.permute.xlu1 %655 }
  0x9b   :  { %v2145_v15 = vpop.permute.xlu0 %650 }
  0x9d   :  { %v2147_v16 = vpop.permute.xlu1 %665 }
  0x9f   :  { %v2149_v18 = vpop.permute.xlu0 %660 }
  0xa1   :  { %v117_v27 = vpop.permute.xlu1 %116 }
  0xa3   :  { %v112_v30 = vpop.permute.xlu0 %111 }
  0xa5   :  { %v127_v39 = vpop.permute.xlu1 %126 }
  0xa7   :  { %v122_v42 = vpop.permute.xlu0 %121 }
  0xa9   :  { %v137_v55 = vpop.permute.xlu1 %136 }
  0xab   :  { %v132_v58 = vpop.permute.xlu0 %131 }
  0xdb   :  { %v1619_v17 = vpop.f32.mrb[0].mxu0 }
  0xdc   :  { %v302_v19 = vadd.f32 %v1619_v17, %v77_v5  ;;  %v296_v20 = vpop.f32.mrb[1].mxu0 }
  0xdd   :  { %v297_v21 = vadd.f32 %v296_v20, %v72_v3  ;;  %v147_v3 = vpop.permute.xlu1 %146 }
  0xde   :  { %v396_v22 = vmax.f32 %v302_v19, 0.0 }
  0xdf   :  { %v395_v23 = vmax.f32 %v297_v21, 0.0  ;;  %v1622_v24 = vpop.f32.mrb[2].mxu0 }
  0xe0   :  { %v312_v25 = vadd.f32 %v1622_v24, %v87_v4  ;;  %v306_v26 = vpop.f32.mrb[3].mxu0 }
  0xe1   :  { %v307_v28 = vadd.f32 %v306_v26, %v82_v2  ;;  %v1776_v29 = vpack.c.bf16 %v396_v22, %v395_v23  ;;  %v157_v24 = vpop.permute.xlu1 %156 }
  0xe2   :  { %v398_v31 = vmax.f32 %v312_v25, 0.0 }
  0xe3   :  { %v397_v32 = vmax.f32 %v307_v28, 0.0  ;;  %v1625_v33 = vpop.f32.mrb[4].mxu0  ;;  %1777 = vmatprep.subr.bf16.mxu1 %v1776_v29 }
  0xe4   :  { %v322_v34 = vadd.f32 %v1625_v33, %v97_v10  ;;  %v316_v35 = vpop.f32.mrb[5].mxu0  ;;  %1779 = vmatpush3.bf16.msra.mxu1 %v1776_v29  ;;  %v142_v10 = vpop.permute.xlu0 %141 }
  0xe5   :  { %v1780_v36 = vpack.c.bf16 %v398_v31, %v397_v32  ;;  %v317_v37 = vadd.f32 %v316_v35, %v92_v11 }
  0xe6   :  { %v400_v38 = vmax.f32 %v322_v34, 0.0 }
  0xe7   :  { %v399_v40 = vmax.f32 %v317_v37, 0.0  ;;  %v1628_v41 = vpop.f32.mrb[6].mxu0  ;;  %1781 = vmatprep.subr.bf16.mxu1 %v1780_v36 }
  0xe8   :  { %v332_v43 = vadd.f32 %v1628_v41, %v107_v12  ;;  %v326_v44 = vpop.f32.mrb[7].mxu0  ;;  %1783 = vmatpush3.bf16.msra.mxu1 %v1780_v36  ;;  %v167_v36 = vpop.permute.xlu1 %166 }
  0xe9   :  { %v2154_v46 = vpack.c.bf16 %v400_v38, %v399_v40  ;;  %v327_v47 = vadd.f32 %v326_v44, %v102_v13 }
  0xea   :  { %v402_v49 = vmax.f32 %v332_v43, 0.0 }
  0xeb   :  { %v401_v50 = vmax.f32 %v327_v47, 0.0  ;;  %v1631_v51 = vpop.f32.mrb[8].mxu0  ;;  %1656 = vmatmul.mubr.msk.f32.vlgmr.msra.gmra.mrb[0].mxu1 %vm461_vm1, %v438_v45 }
  0xec   :  { %v342_v52 = vadd.f32 %v1631_v51, %v117_v27  ;;  %v336_v53 = vpop.f32.mrb[9].mxu0  ;;  %1658 = vmatprep.mubr.msk.f32.mxu1 %vm461_vm1, %v439_v48  ;;  %v152_v27 = vpop.permute.xlu0 %151  ;;  %v1878_v48 = vmov 0.0|0.0  }
  0xed   :  { %v2164_v56 = vpack.c.bf16 %v402_v49, %v401_v50  ;;  %v337_v57 = vadd.f32 %v336_v53, %v112_v30  ;;  %1784 = vmatprep.subr.bf16.mxu1 %v1878_v48  ;;  %1812 = vmatprep.subr.bf16.mxu0 %v1878_v48  ;;  %v1880_v49 = vmov 0.0  }
  0xee   :  { %v404_v59 = vmax.f32 %v342_v52, 0.0  ;;  %1719 = vmatprep.mubr.msk.f32.mxu0 %vm1879_vm2, %v1880_v49 }
  0xef   :  { %v403_v60 = vmax.f32 %v337_v57, 0.0  ;;  %v1634_v61 = vpop.f32.mrb[10].mxu0  ;;  %1659 = vmatmul.mubr.msk.f32.gmra.mrb[2].mxu1 %vm461_vm1, %v440_v54 }
  0xf0   :  { %v352_v62 = vadd.f32 %v1634_v61, %v127_v39  ;;  %v346_v63 = vpop.f32.mrb[11].mxu0  ;;  %v162_v39 = vpop.permute.xlu0 %161  ;;  %1669 = vmatprep.mubr.msk.f32.mxu1 %vm1879_vm2, %v1880_v49 }
  0xf1   :  { %v2167_v0 = vpack.c.bf16 %v404_v59, %v403_v60  ;;  %v347_v1 = vadd.f32 %v346_v63, %v122_v42 }
  0xf2   :  { %v406_v2 = vmax.f32 %v352_v62, 0.0 }
  0xf3   :  { %v405_v4 = vmax.f32 %v347_v1, 0.0  ;;  %v1637_v5 = vpop.f32.mrb[12].mxu0 }
  0xf4   :  { %v362_v11 = vadd.f32 %v1637_v5, %v137_v55  ;;  %v356_v12 = vpop.f32.mrb[13].mxu0 }
  0xf5   :  { %v2169_v13 = vpack.c.bf16 %v406_v2, %v405_v4  ;;  %v357_v17 = vadd.f32 %v356_v12, %v132_v58 }
  0xf6   :  { %v408_v19 = vmax.f32 %v362_v11, 0.0 }
  0xf7   :  { %v407_v20 = vmax.f32 %v357_v17, 0.0  ;;  %v1640_v21 = vpop.f32.mrb[14].mxu0 }
  0xf8   :  { %v372_v22 = vadd.f32 %v1640_v21, %v147_v3  ;;  %v366_v23 = vpop.f32.mrb[15].mxu0 }
  0xf9   :  { %v2171_v25 = vpack.c.bf16 %v408_v19, %v407_v20  ;;  %v367_v26 = vadd.f32 %v366_v23, %v142_v10 }
  0xfa   :  { %v410_v28 = vmax.f32 %v372_v22, 0.0 }
  0xfb   :  { %v409_v29 = vmax.f32 %v367_v26, 0.0  ;;  %v1643_v30 = vpop.f32.mrb[16].mxu0 }
  0xfc   :  { %v382_v31 = vadd.f32 %v1643_v30, %v157_v24  ;;  %v376_v32 = vpop.f32.mrb[17].mxu0 }
  0xfd   :  { %v2173_v33 = vpack.c.bf16 %v410_v28, %v409_v29  ;;  %v377_v34 = vadd.f32 %v376_v32, %v152_v27 }
  0xfe   :  { %v412_v35 = vmax.f32 %v382_v31, 0.0 }
  0xff   :  { %v411_v37 = vmax.f32 %v377_v34, 0.0  ;;  %v1646_v38 = vpop.f32.mrb[18].mxu0 }
 0x100   :  { %v392_v40 = vadd.f32 %v1646_v38, %v167_v36  ;;  %v386_v41 = vpop.f32.mrb[19].mxu0  ;;  %v1510_v36 = vld [vmem:[%s2347_s3 + $0x70] sm:$0xff]  ;;  %v1518_v38 = vld [vmem:[%s2347_s3 + $0x88] sm:$0xff] }
 0x101   :  { %v2175_v42 = vpack.c.bf16 %v412_v35, %v411_v37  ;;  %v387_v43 = vadd.f32 %v386_v41, %v162_v39  ;;  %v1517_v37 = vld [vmem:[%s2347_s3 + $0x80] sm:$0xff]  ;;  %v1519_v39 = vld [vmem:[%s2347_s3 + $0x90] sm:$0xff]  ;;  %v858_v41 = vpop.permute.xlu1 %857 }
 0x102   :  { %v414_v44 = vmax.f32 %v392_v40, 0.0  ;;  %v1520_v40 = vld [vmem:[%s2347_s3 + $0x98] sm:$0xff] }
 0x103   :  { %v413_v45 = vmax.f32 %v387_v43, 0.0 }
 0x105   :  { %v2177_v47 = vpack.c.bf16 %v414_v44, %v413_v45 }
 0x1be   :  { %v1657_v50 = vpop.f32.mrb[0].mxu1 }
 0x1bf   :  { %v546_v51 = vadd.f32 %v1657_v50, %v2135_v6  ;;  %v540_v52 = vpop.f32.mrb[1].mxu1  ;;  %v2193_v6 = vld [vmem:[%s2349_s5] sm:$0x1f] }
 0x1c0   :  { %v541_v53 = vadd.f32 %v540_v52, %v2137_v7  ;;  %v1490_v7 = vld [vmem:[%s2347_s3 + $0x20] sm:$0xff] }
 0x1c1   :  { %v560_v54 = vmax.f32 %v546_v51, 0.0 }
 0x1c2   :  { %v559_v55 = vmax.f32 %v541_v53, 0.0  ;;  %v1660_v57 = vpop.f32.mrb[2].mxu1 }
 0x1c3   :  { %v556_v58 = vadd.f32 %v1660_v57, %v2139_v8  ;;  %v550_v59 = vpop.f32.mrb[3].mxu1  ;;  %v1491_v8 = vld [vmem:[%s2347_s3 + $0x28] sm:$0xff] }
 0x1c4   :  { %v1785_v60 = vpack.c.bf16 %v560_v54, %v559_v55  ;;  %v551_v61 = vadd.f32 %v550_v59, %v2141_v9  ;;  %v1492_v9 = vld [vmem:[%s2347_s3 + $0x30] sm:$0xff] }
 0x1c5   :  { %v562_v62 = vmax.f32 %v556_v58, 0.0 }
 0x1c6   :  { %v561_v63 = vmax.f32 %v551_v61, 0.0  ;;  %1786 = vmatpush3.bf16.msra.mxu1 %v1785_v60 }
 0x1c7   :  { %1787 = vmatprep.subr.bf16.mxu1 %v1878_v48 }
 0x1c8   :  { %v1788_v1 = vpack.c.bf16 %v562_v62, %v561_v63 }
 0x1ca   :  { %1789 = vmatpush3.bf16.msra.mxu1 %v1788_v1 }
 0x1cb   :  { %1791 = vmatprep.subr.bf16.mxu1 %v2154_v46 }
 0x1cd   :  { %1670 = vmatmul.mubr.msk.f32.vlgmr.msra.gmra.mrb[4].mxu1 %vm461_vm1, %v2193_v6 }
 0x1ce   :  { %1793 = vmatpush3.bf16.msra.mxu1 %v2154_v46  ;;  %1680 = vmatprep.mubr.msk.f32.mxu1 %vm461_vm1, %v1490_v7  ;;  %v1493_v46 = vld [vmem:[%s2347_s3 + $0x38] sm:$0xff] }
 0x1cf   :  { %1795 = vmatprep.subr.bf16.mxu1 %v2164_v56 }
 0x1d2   :  { %1797 = vmatpush3.bf16.msra.mxu1 %v2164_v56  ;;  %v2220_v56 = vpop.permute.xlu0 %852 }
 0x1d3   :  { %1798 = vmatprep.subr.bf16.mxu1 %v1878_v48 }
 0x1d5   :  { %1681 = vmatmul.mubr.msk.f32.vlgmr.msra.gmra.mrb[6].mxu1 %vm461_vm1, %v1491_v8 }
 0x1d6   :  { %1683 = vmatprep.mubr.msk.f32.mxu1 %vm461_vm1, %v1492_v9  ;;  %v2222_v2 = vpop.permute.xlu0 %862 }
 0x1d9   :  { %1684 = vmatmul.mubr.msk.f32.gmra.mrb[8].mxu1 %vm461_vm1, %v1493_v46 }
 0x1da   :  { %1694 = vmatprep.mubr.msk.f32.mxu1 %vm1879_vm2, %v1880_v49  ;;  %v2224_v3 = vpop.permute.xlu0 %1054 }
 0x1de   :  { %v2226_v4 = vpop.permute.xlu0 %1064 }
 0x1e2   :  { %v2228_v5 = vpop.permute.xlu0 %1256 }
 0x1e6   :  { %v2230_v10 = vpop.permute.xlu0 %1266 }
 0x1ea   :  { %v2232_v11 = vpop.permute.xlu0 %565 }
 0x2a0   :  { %v637_v12 = vpop.f32.mrb[4].mxu1 }
 0x2a1   :  { %v638_v17 = vadd.f32 %v637_v12, %v2232_v11  ;;  %v1671_v19 = vpop.f32.mrb[5].mxu1 }
 0x2a3   :  { %642 = vst.msk [vmem:[#allocation2] sm:$0x1] %vm641_vm3, %v638_v17  ;;  %v971_v17 = vrot.slane %v2193_v6, 2 }
 0x2a8   :  { %v1682_v20 = vpop.f32.mrb[6].mxu1 }
 0x2a9   :  { %v752_v21 = vadd.f32 %v1682_v20, %v2143_v14  ;;  %v746_v22 = vpop.f32.mrb[7].mxu1  ;;  %v769_v14 = vrot.slane %v2193_v6, 1 }
 0x2aa   :  { %v747_v23 = vadd.f32 %v746_v22, %v2145_v15  ;;  %v1499_v15 = vld [vmem:[%s2347_s3 + $0x40] sm:$0xff] }
 0x2ab   :  { %v766_v24 = vmax.f32 %v752_v21, 0.0 }
 0x2ac   :  { %v765_v26 = vmax.f32 %v747_v23, 0.0  ;;  %v1685_v27 = vpop.f32.mrb[8].mxu1 }
 0x2ad   :  { %v762_v28 = vadd.f32 %v1685_v27, %v2147_v16  ;;  %v756_v29 = vpop.f32.mrb[9].mxu1  ;;  %v1500_v16 = vld [vmem:[%s2347_s3 + $0x48] sm:$0xff] }
 0x2ae   :  { %v1799_v30 = vpack.c.bf16 %v766_v24, %v765_v26  ;;  %v757_v31 = vadd.f32 %v756_v29, %v2149_v18  ;;  %v1501_v18 = vld [vmem:[%s2347_s3 + $0x50] sm:$0xff] }
 0x2af   :  { %v768_v32 = vmax.f32 %v762_v28, 0.0 }
 0x2b0   :  { %v767_v34 = vmax.f32 %v757_v31, 0.0  ;;  %1800 = vmatpush3.bf16.msra.mxu1 %v1799_v30 }
 0x2b1   :  { %1801 = vmatprep.subr.bf16.mxu1 %v1878_v48 }
 0x2b2   :  { %v1802_v35 = vpack.c.bf16 %v768_v32, %v767_v34 }
 0x2b4   :  { %1803 = vmatpush3.bf16.msra.mxu1 %v1802_v35  ;;  %v1173_v35 = vrot.slane %v2193_v6, 3 }
 0x2b5   :  { %1805 = vmatprep.subr.bf16.mxu1 %v2167_v0 }
 0x2b7   :  { %1695 = vmatmul.mubr.msk.f32.vlgmr.msra.gmra.mrb[10].mxu1 %vm461_vm1, %v769_v14 }
 0x2b8   :  { %1807 = vmatpush3.bf16.msra.mxu1 %v2167_v0  ;;  %1705 = vmatprep.mubr.msk.f32.mxu1 %vm461_vm1, %v1499_v15  ;;  %v1502_v0 = vld [vmem:[%s2347_s3 + $0x58] sm:$0xff] }
 0x2b9   :  { %1809 = vmatprep.subr.bf16.mxu1 %v2169_v13 }
 0x2bc   :  { %1811 = vmatpush3.bf16.msra.mxu1 %v2169_v13  ;;  %v1508_v13 = vld [vmem:[%s2347_s3 + $0x60] sm:$0xff] }
 0x2bd   :  { %1819 = vmatprep.subr.bf16.mxu1 %v2171_v25 }
 0x2bf   :  { %1706 = vmatmul.mubr.msk.f32.vlgmr.msra.gmra.mrb[12].mxu1 %vm461_vm1, %v1500_v16 }
 0x2c0   :  { %1821 = vmatpush3.bf16.msra.mxu1 %v2171_v25  ;;  %1708 = vmatprep.mubr.msk.f32.mxu1 %vm461_vm1, %v1501_v18  ;;  %v1509_v25 = vld [vmem:[%s2347_s3 + $0x68] sm:$0xff] }
 0x2c1   :  { %1823 = vmatprep.subr.bf16.mxu1 %v2173_v33 }
 0x2c3   :  { %1709 = vmatmul.mubr.msk.f32.gmra.mrb[14].mxu1 %vm461_vm1, %v1502_v0 }
 0x2c4   :  { %1825 = vmatpush3.bf16.msra.mxu1 %v2173_v33  ;;  %1730 = vmatprep.mubr.msk.f32.mxu1 %vm461_vm1, %v1508_v13  ;;  %v1511_v33 = vld [vmem:[%s2347_s3 + $0x78] sm:$0xff]  ;;  %s1881_s3 = smov [#allocation2]  }
 0x2c5   :  { %1833 = vmatprep.subr.bf16.mxu1 %v2175_v42  ;;  %s1457_s5 = sshll.u32 %s1881_s3, 4  ;;  %s1458_s5 = int_to_ptr.vmem [resolvable:$true] %s1457_s5 }
 0x2c6   :  { %s1853_s13 = scalar_lea.vmem %s1458_s5, 128  ;;  %p1858_p1 = scmp.lt.s32.totalorder %s1458_s5, %s1458_s5 }
 0x2c7   :  { %1731 = vmatmul.mubr.msk.f32.vlgmr.msra.gmra.mrb[16].mxu1 %vm461_vm1, %v1509_v25  ;;  %p1854_p0 = scmp.ne.s32.totalorder %s1458_s5, %s1853_s13  ;;  %p1859_p2 = scmp.lt.s32.totalorder %s1853_s13, %s1853_s13 }
 0x2c8   :  { %1835 = vmatpush3.bf16.msra.mxu1 %v2175_v42  ;;  %1733 = vmatprep.mubr.msk.f32.mxu1 %vm461_vm1, %v1510_v36  ;;  %v770_v42 = vrot.slane %v2232_v11, 1 }
 0x2c9   :  { %1837 = vmatprep.subr.bf16.mxu1 %v2177_v47  ;;  %p1860_p3 = por %p1859_p2, %p1858_p1 }
 0x2cb   :  { %1734 = vmatmul.mubr.msk.f32.gmra.mrb[18].mxu1 %vm461_vm1, %v1511_v33  ;;  %v1375_v33 = vrot.slane %v2193_v6, 4  ;;  %p1861_p4 = pnand %p1860_p3, %p1854_p0 }
 0x2cc   :  { %1839 = vmatpush3.bf16.msra.mxu1 %v2177_v47  ;;  %1755 = vmatprep.mubr.msk.f32.mxu1 %vm461_vm1, %v1517_v37  ;;  %v868_v47 = vpop.permute.xlu1 %867  ;;  %v972_v37 = vrot.slane %v2232_v11, 2 }
 0x2cf   :  { %1756 = vmatmul.mubr.msk.f32.vlgmr.msra.gmra.mrb[20].mxu1 %vm461_vm1, %v1518_v38 }
 0x2d0   :  { %1758 = vmatprep.mubr.msk.f32.mxu1 %vm461_vm1, %v1519_v39  ;;  %v1060_v53 = vpop.permute.xlu1 %1059 }
 0x2d3   :  { %1759 = vmatmul.mubr.msk.f32.gmra.mrb[22].mxu1 %vm461_vm1, %v1520_v40  ;;  %v1174_v40 = vrot.slane %v2232_v11, 3 }
 0x2d4   :  { %v1070_v1 = vpop.permute.xlu1 %1069 }
 0x2d8   :  { %v1262_v23 = vpop.permute.xlu1 %1261 }
 0x38a   :  { %v840_v43 = vpop.f32.mrb[10].mxu1 }
 0x38b   :  { %v841_v44 = vadd.f32 %v840_v43, %v770_v42  ;;  %v1696_v45 = vpop.f32.mrb[11].mxu1 }
 0x38d   :  { %844 = vst.msk [vmem:[#allocation2 + $0x1] sm:$0x1] %vm641_vm3, %v841_v44 }
 0x392   :  { %v1707_v50 = vpop.f32.mrb[12].mxu1 }
 0x393   :  { %v954_v51 = vadd.f32 %v1707_v50, %v858_v41  ;;  %v948_v52 = vpop.f32.mrb[13].mxu1 }
 0x394   :  { %v949_v54 = vadd.f32 %v948_v52, %v2220_v56 }
 0x395   :  { %v968_v55 = vmax.f32 %v954_v51, 0.0 }
 0x396   :  { %v967_v57 = vmax.f32 %v949_v54, 0.0  ;;  %v1710_v58 = vpop.f32.mrb[14].mxu1 }
 0x397   :  { %v964_v59 = vadd.f32 %v1710_v58, %v868_v47  ;;  %v958_v60 = vpop.f32.mrb[15].mxu1 }
 0x398   :  { %v1813_v61 = vpack.c.bf16 %v968_v55, %v967_v57  ;;  %v959_v62 = vadd.f32 %v958_v60, %v2222_v2 }
 0x399   :  { %v970_v63 = vmax.f32 %v964_v59, 0.0 }
 0x39a   :  { %v969_v7 = vmax.f32 %v959_v62, 0.0  ;;  %1814 = vmatpush3.bf16.msra.mxu0 %v1813_v61  ;;  %v1732_v8 = vpop.f32.mrb[16].mxu1 }
 0x39b   :  { %v1156_v9 = vadd.f32 %v1732_v8, %v1060_v53  ;;  %v1150_v46 = vpop.f32.mrb[17].mxu1  ;;  %1815 = vmatprep.subr.bf16.mxu0 %v1878_v48 }
 0x39c   :  { %v1816_v12 = vpack.c.bf16 %v970_v63, %v969_v7  ;;  %v1151_v56 = vadd.f32 %v1150_v46, %v2224_v3 }
 0x39d   :  { %v1170_v19 = vmax.f32 %v1156_v9, 0.0 }
 0x39e   :  { %v1169_v20 = vmax.f32 %v1151_v56, 0.0  ;;  %1817 = vmatpush3.bf16.msra.mxu0 %v1816_v12  ;;  %v1735_v21 = vpop.f32.mrb[18].mxu1 }
 0x39f   :  { %v1166_v22 = vadd.f32 %v1735_v21, %v1070_v1  ;;  %v1160_v2 = vpop.f32.mrb[19].mxu1  ;;  %1826 = vmatprep.subr.bf16.mxu0 %v1878_v48 }
 0x3a0   :  { %v1827_v24 = vpack.c.bf16 %v1170_v19, %v1169_v20  ;;  %v1161_v26 = vadd.f32 %v1160_v2, %v2226_v4  ;;  %v1272_v4 = vpop.permute.xlu1 %1271 }
 0x3a1   :  { %v1172_v27 = vmax.f32 %v1166_v22, 0.0  ;;  %1720 = vmatmul.mubr.msk.f32.vlgmr.msra.gmra.mrb[20].mxu0 %vm461_vm1, %v971_v17 }
 0x3a2   :  { %v1171_v28 = vmax.f32 %v1161_v26, 0.0  ;;  %1828 = vmatpush3.bf16.msra.mxu0 %v1827_v24  ;;  %v1757_v3 = vpop.f32.mrb[20].mxu1  ;;  %1744 = vmatprep.mubr.msk.f32.mxu0 %vm1879_vm2, %v1880_v49 }
 0x3a3   :  { %v1358_v29 = vadd.f32 %v1757_v3, %v1262_v23  ;;  %v1352_v30 = vpop.f32.mrb[21].mxu1  ;;  %1829 = vmatprep.subr.bf16.mxu0 %v1878_v48 }
 0x3a4   :  { %v1830_v31 = vpack.c.bf16 %v1172_v27, %v1171_v28  ;;  %v1353_v32 = vadd.f32 %v1352_v30, %v2228_v5 }
 0x3a5   :  { %v1372_v34 = vmax.f32 %v1358_v29, 0.0 }
 0x3a6   :  { %v1371_v14 = vmax.f32 %v1353_v32, 0.0  ;;  %1831 = vmatpush3.bf16.msra.mxu0 %v1830_v31  ;;  %v1760_v15 = vpop.f32.mrb[22].mxu1 }
 0x3a7   :  { %v1368_v16 = vadd.f32 %v1760_v15, %v1272_v4  ;;  %v1362_v18 = vpop.f32.mrb[23].mxu1  ;;  %1840 = vmatprep.subr.bf16.mxu0 %v1878_v48 }
 0x3a8   :  { %v1841_v0 = vpack.c.bf16 %v1372_v34, %v1371_v14  ;;  %v1363_v13 = vadd.f32 %v1362_v18, %v2230_v10 }
 0x3a9   :  { %v1374_v25 = vmax.f32 %v1368_v16, 0.0  ;;  %1745 = vmatmul.mubr.msk.f32.vlgmr.msra.gmra.mrb[22].mxu0 %vm461_vm1, %v1173_v35 }
 0x3aa   :  { %v1373_v36 = vmax.f32 %v1363_v13, 0.0  ;;  %1842 = vmatpush3.bf16.msra.mxu0 %v1841_v0  ;;  %1769 = vmatprep.mubr.msk.f32.mxu0 %vm1879_vm2, %v1880_v49 }
 0x3ab   :  { %1843 = vmatprep.subr.bf16.mxu0 %v1878_v48  ;;  %v1376_v48 = vrot.slane %v2232_v11, 4 }
 0x3ac   :  { %v1844_v5 = vpack.c.bf16 %v1374_v25, %v1373_v36 }
 0x3ae   :  { %1845 = vmatpush3.bf16.msra.mxu0 %v1844_v5 }
 0x3b1   :  { %1770 = vmatmul.mubr.msk.f32.vlgmr.msra.gmra.mrb[24].mxu0 %vm461_vm1, %v1375_v33 }
 0x474   :  { %v1042_v38 = vpop.f32.mrb[20].mxu0 }
 0x475   :  { %v1043_v10 = vadd.f32 %v1042_v38, %v972_v37  ;;  %v1721_v39 = vpop.f32.mrb[21].mxu0 }
 0x477   :  { %1046 = vst.msk [vmem:[#allocation2 + $0x2] sm:$0x1] %vm641_vm3, %v1043_v10 }
 0x47c   :  { %v1244_v41 = vpop.f32.mrb[22].mxu0 }
 0x47d   :  { %v1245_v42 = vadd.f32 %v1244_v41, %v1174_v40  ;;  %v1746_v49 = vpop.f32.mrb[23].mxu0 }
 0x47f   :  { %1248 = vst.msk [vmem:[#allocation2 + $0x3] sm:$0x1] %vm641_vm3, %v1245_v42 }
 0x484   :  { %v1446_v6 = vpop.f32.mrb[24].mxu0 }
 0x485   :  { %v1447_v43 = vadd.f32 %v1446_v6, %v1376_v48  ;;  %v1771_v44 = vpop.f32.mrb[25].mxu0 }
 0x487   :  { %1450 = vst.msk [vmem:[#allocation2 + $0x4] sm:$0x1] %vm641_vm3, %v1447_v43 }
 0x488   :  { %1864 = shalt.err (!%p1861_p4)
}
 0x489   :  { %s1865_s16 = scalar_lea.hbm %s2351_s7, 128 }
 0x48a   :  { %p1866_p5 = scmp.ne.s32.totalorder %s2351_s7, %s1865_s16  ;;  %p1869_p6 = scmp.lt.u32.totalorder %s1865_s16, %s2351_s7 }
 0x48c   :  { %p1871_p7 = pnand %p1869_p6, %p1866_p5 }
 0x48e   :  { %1874 = shalt.err (!%p1871_p7)
}
 0x48f   :  { %1460 = dma.vmem_to_hbm [thread:$0]  %s1458_s5, 128, %s2351_s7, [#allocation3]  }
 0x490   :  { %1875 = dma.done.wait [#allocation3], 128  }
 0x491   :  { %1876 = vsyncadd [#allocation3], 4294967168 }
 0x492   :  { %1464 = vsyncpa [#allocation3], 1 }

</bundles_post_ra>
